<compile_context>
chip_gen: v6e
topology: v6e:2x2x1
jax: 0.10.0
libtpu: 0.0.40
codegen_flags: <defaults>
</compile_context>

<pallas_src>
import jax
import jax.numpy as jnp
from jax.experimental import pallas as pl
from jax.experimental.pallas import tpu as pltpu


LANE = 128
SUBLANE = 8


def _cdiv(a, b):
    return -(-a // b)


def _round_up(n, m):
    return ((n + m - 1) // m) * m


# ----------------------------------------------------------------------------
# Kernel
# ----------------------------------------------------------------------------
def mlp_kernel(x_ref, w0_ref, b0_ref, w1_ref, b1_ref, o_ref):
    # fc0: bf16 operands on the MXU, f32 accumulate, f32 bias.
    x = x_ref[...].astype(jnp.bfloat16)
    h = jnp.dot(x, w0_ref[...], preferred_element_type=jnp.float32)
    h = jnp.maximum(h + b0_ref[...], 0.0)                       # bias + ReLU (f32)
    # fc1: bf16 operands, f32 accumulate, f32 bias.
    y = jnp.dot(h.astype(jnp.bfloat16), w1_ref[...],
                preferred_element_type=jnp.float32)
    y = y + b1_ref[...]
    # dropout(p=0) == Identity
    o_ref[...] = y.astype(o_ref.dtype)


# ----------------------------------------------------------------------------
# One-time parameter preparation (do NOT call per forward pass)
# ----------------------------------------------------------------------------
def prepare_params(w0, b0, w1, b1):
    """nn.Linear weights pre-transposed to (in, out).  Cast weights to bf16
    (native MXU dtype); keep biases f32 and reshape to (1, N) rows."""
    return (
        w0.astype(jnp.bfloat16),
        b0.reshape(1, -1).astype(jnp.float32),
        w1.astype(jnp.bfloat16),
        b1.reshape(1, -1).astype(jnp.float32),
    )


# ----------------------------------------------------------------------------
# Tiling / VMEM helpers
# ----------------------------------------------------------------------------
def _choose_tb(B, block_b):
    """Balanced batch tiles: single full-extent tile at small B (no padding);
    otherwise TB = round_up(cdiv(B, num_tiles), alignment)."""
    num_tiles = max(1, _cdiv(B, block_b))
    if num_tiles == 1:
        return B, 1
    # 256-aligned tiles at large batch (v6e/v7x MXU is 2x256^2); else sublane.
    align = 256 if B >= 4 * 256 else SUBLANE
    tb = _round_up(_cdiv(B, num_tiles), align)
    num_tiles = _cdiv(B, tb)
    return tb, num_tiles


def _vmem_cap_bytes():
    """Per-generation VMEM budget with compiler-scratch headroom."""
    cap = 64 << 20
    try:
        cap = int(getattr(pltpu.get_tpu_info(), "vmem_capacity_bytes", cap))
    except Exception:
        pass
    # ~12.5% headroom (min 8 MiB): ~56 MiB on v7x, ~112 MiB on v5e/v6e.
    return max(cap - max(cap // 8, 8 << 20), 16 << 20)


def _vmem_limit(TB, C_in, H, C_out, x_dt, w_dt, b_dt, o_dt, w_bufs):
    xi = jnp.dtype(x_dt).itemsize
    wi = jnp.dtype(w_dt).itemsize
    bi = jnp.dtype(b_dt).itemsize
    oi = jnp.dtype(o_dt).itemsize
    est = (
        2 * TB * C_in * xi                       # x tile (double-buffered)
        + 2 * TB * C_out * oi                    # out tile (double-buffered)
        + w_bufs * C_in * H * wi                 # W0 (resident)
        + w_bufs * H * C_out * wi                # W1 (resident)
        + w_bufs * SUBLANE * (H + C_out) * bi    # biases (sublane-padded)
        + TB * H * (4 + 2)                       # h in f32 + bf16 copy
        + TB * C_out * 4                         # y in f32
    )
    return int(min(max(2 * est + (4 << 20), 16 << 20), _vmem_cap_bytes()))


# ----------------------------------------------------------------------------
# Forward wrapper
# ----------------------------------------------------------------------------
def _mlp_call(x_in, w0, b0, w1, b1, *, TB, num_tiles, C_in, H, C_out,
              out_dtype, weight_buffers):
    # Constant-index weights/biases: request single buffering when asked.
    w_mode = dict(pipeline_mode=pl.Buffered(1)) if weight_buffers == 1 else {}
    vmem_limit = _vmem_limit(TB, C_in, H, C_out, x_in.dtype, w0.dtype,
                             b0.dtype, out_dtype, max(weight_buffers, 1))
    return pl.pallas_call(
        mlp_kernel,
        out_shape=jax.ShapeDtypeStruct((TB * num_tiles, C_out), out_dtype),
        grid_spec=pltpu.PrefetchScalarGridSpec(
            num_scalar_prefetch=0,
            grid=(num_tiles,),
            in_specs=[
                pl.BlockSpec((TB, C_in), lambda i: (i, 0)),            # x: batch-tiled
                pl.BlockSpec((C_in, H), lambda i: (0, 0), **w_mode),   # W0: resident
                pl.BlockSpec((1, H), lambda i: (0, 0), **w_mode),      # b0: resident
                pl.BlockSpec((H, C_out), lambda i: (0, 0), **w_mode),  # W1: resident
                pl.BlockSpec((1, C_out), lambda i: (0, 0), **w_mode),  # b1: resident
            ],
            out_specs=pl.BlockSpec((TB, C_out), lambda i: (i, 0)),
        ),
        compiler_params=pltpu.CompilerParams(
            dimension_semantics=("parallel",),    # megacore sharding on v7x
            vmem_limit_bytes=vmem_limit,
        ),
    )(x_in, w0, b0, w1, b1)


def mlp_forward(x, params, *, block_b=512):
    """x: (B, C_in) f32; params from prepare_params (bf16 weights, f32 biases)."""
    w0, b0, w1, b1 = params
    B, C_in = x.shape
    H = w0.shape[1]
    C_out = w1.shape[1]
    assert w0.shape == (C_in, H) and b0.shape == (1, H)
    assert w1.shape == (H, C_out) and b1.shape == (1, C_out)

    TB, num_tiles = _choose_tb(B, block_b)
    B_pad = TB * num_tiles
    x_in = x if B_pad == B else jnp.zeros((B_pad, C_in), x.dtype).at[:B].set(x)

    last_err = None
    for wbuf in (1, 2):   # try single-buffered resident weights, fall back to default
        try:
            out = _mlp_call(x_in, w0, b0, w1, b1,
                            TB=TB, num_tiles=num_tiles,
                            C_in=C_in, H=H, C_out=C_out,
                            out_dtype=x.dtype, weight_buffers=wbuf)
            return out if B_pad == B else out[:B]
        except Exception as e:          # pl.Buffered(1) unsupported on this JAX
            last_err = e
    raise last_err


def reference_mlp(x, w0, b0, w1, b1):
    h = jnp.maximum(x @ w0 + b0, 0.0)
    return h @ w1 + b1


# ----------------------------------------------------------------------------
# Demo / self-test
# ----------------------------------------------------------------------------
if __name__ == "__main__":
    # Module hyperparameters (hidden_layers=1, dropout=0).
    batch = 48
    input_channels = 16
    hidden_channels = 32
    output_channels = 8

    key = jax.random.PRNGKey(0)
    kx, kw0, kb0, kw1, kb1 = jax.random.split(key, 5)

    x = jax.random.normal(kx, (batch, input_channels), dtype=jnp.float32)
    # Parameters with nn.Linear semantics, pre-transposed to (in, out).
    w0 = jax.random.normal(kw0, (input_channels, hidden_channels),
                           dtype=jnp.float32) * 0.1
    b0 = jax.random.normal(kb0, (hidden_channels,), dtype=jnp.float32) * 0.1
    w1 = jax.random.normal(kw1, (hidden_channels, output_channels),
                           dtype=jnp.float32) * 0.1
    b1 = jax.random.normal(kb1, (output_channels,), dtype=jnp.float32) * 0.1

    # One-time parameter prep (bf16 weights, f32 (1,N) biases) -- not per call.
    params = prepare_params(w0, b0, w1, b1)
    ref = reference_mlp(x, w0, b0, w1, b1)

    # bf16 MXU operands with f32 accumulation -> looser tolerance vs f32 ref.
    TOL = dict(atol=3e-2, rtol=3e-2)

    # 1) Default path: single grid step, no padding anywhere.
    out = mlp_forward(x, params)
    jax.block_until_ready(out)
    assert out.shape == (batch, output_channels)
    assert jnp.allclose(out, ref, **TOL), (
        f"mismatch (single tile), max abs err {float(jnp.max(jnp.abs(out - ref)))}")

    # 2) Multi-step pipelined grid (exercise batch tiling).
    out2 = mlp_forward(x, params, block_b=16)
    jax.block_until_ready(out2)
    assert jnp.allclose(out2, ref, **TOL), (
        f"mismatch (multi tile), max abs err {float(jnp.max(jnp.abs(out2 - ref)))}")

    # 3) Ragged batch (exercise balanced-tile tail padding path).
    x3 = jax.random.normal(kx, (50, input_channels), dtype=jnp.float32)
    out3 = mlp_forward(x3, params, block_b=16)
    jax.block_until_ready(out3)
    ref3 = reference_mlp(x3, w0, b0, w1, b1)
    assert out3.shape == (50, output_channels)
    assert jnp.allclose(out3, ref3, **TOL), (
        f"mismatch (ragged batch), max abs err {float(jnp.max(jnp.abs(out3 - ref3)))}")

    print("KERNEL_OK")
</pallas_src>

<mosaic_0001>
module attributes {stable_mosaic.version = 11 : i64} {
  func.func @mlp_kernel(%arg0: i32, %arg1: memref<48x16xf32, #tpu.memory_space<vmem>>, %arg2: memref<16x32xbf16, #tpu.memory_space<vmem>>, %arg3: memref<1x32xf32, #tpu.memory_space<vmem>>, %arg4: memref<32x8xbf16, #tpu.memory_space<vmem>>, %arg5: memref<1x8xf32, #tpu.memory_space<vmem>>, %arg6: memref<48x8xf32, #tpu.memory_space<vmem>>) attributes {dimension_semantics = [#tpu.dimension_semantics<parallel>], iteration_bounds = array<i64: 1>, scalar_prefetch = 0 : i64, scratch_operands = 0 : i64, tpu.core_type = #tpu.core_type<tc>, window_params = [{transform_indices = @transform_0, window_bounds = array<i64: 48, 16>}, {pipeline_mode = #tpu.pipeline_mode<synchronous>, transform_indices = @transform_1, window_bounds = array<i64: 16, 32>}, {pipeline_mode = #tpu.pipeline_mode<synchronous>, transform_indices = @transform_2, window_bounds = array<i64: 1, 32>}, {pipeline_mode = #tpu.pipeline_mode<synchronous>, transform_indices = @transform_3, window_bounds = array<i64: 32, 8>}, {pipeline_mode = #tpu.pipeline_mode<synchronous>, transform_indices = @transform_4, window_bounds = array<i64: 1, 8>}, {transform_indices = @transform_5, window_bounds = array<i64: 48, 8>}]} {
    %c0 = arith.constant 0 : index
    %c0_0 = arith.constant 0 : index
    %0 = vector.load %arg1[%c0, %c0_0] : memref<48x16xf32, #tpu.memory_space<vmem>>, vector<48x16xf32>
    %1 = arith.truncf %0 : vector<48x16xf32> to vector<48x16xbf16>
    %c0_1 = arith.constant 0 : index
    %c0_2 = arith.constant 0 : index
    %2 = vector.load %arg2[%c0_1, %c0_2] : memref<16x32xbf16, #tpu.memory_space<vmem>>, vector<16x32xbf16>
    %cst = arith.constant dense<0.000000e+00> : vector<48x32xf32>
    %3 = tpu.matmul %1, %2, %cst {dimension_numbers = #tpu.dot_dimension_numbers<[1], [0], [0], [1], [0, 0, 1, 1], [], []>} : vector<48x16xbf16>, vector<16x32xbf16>, vector<48x32xf32> -> vector<48x32xf32>
    %c0_3 = arith.constant 0 : index
    %c0_4 = arith.constant 0 : index
    %4 = vector.load %arg3[%c0_3, %c0_4] : memref<1x32xf32, #tpu.memory_space<vmem>>, vector<1x32xf32>
    %5 = vector.broadcast %4 : vector<1x32xf32> to vector<48x32xf32>
    %6 = arith.addf %3, %5 : vector<48x32xf32>
    %cst_5 = arith.constant 0.000000e+00 : f32
    %7 = vector.broadcast %cst_5 : f32 to vector<48x32xf32>
    %8 = arith.maximumf %6, %7 : vector<48x32xf32>
    %9 = arith.truncf %8 : vector<48x32xf32> to vector<48x32xbf16>
    %c0_6 = arith.constant 0 : index
    %c0_7 = arith.constant 0 : index
    %10 = vector.load %arg4[%c0_6, %c0_7] : memref<32x8xbf16, #tpu.memory_space<vmem>>, vector<32x8xbf16>
    %cst_8 = arith.constant dense<0.000000e+00> : vector<48x8xf32>
    %11 = tpu.matmul %9, %10, %cst_8 {dimension_numbers = #tpu.dot_dimension_numbers<[1], [0], [0], [1], [0, 0, 1, 1], [], []>} : vector<48x32xbf16>, vector<32x8xbf16>, vector<48x8xf32> -> vector<48x8xf32>
    %c0_9 = arith.constant 0 : index
    %c0_10 = arith.constant 0 : index
    %12 = vector.load %arg5[%c0_9, %c0_10] : memref<1x8xf32, #tpu.memory_space<vmem>>, vector<1x8xf32>
    %13 = vector.broadcast %12 : vector<1x8xf32> to vector<48x8xf32>
    %14 = arith.addf %11, %13 : vector<48x8xf32>
    %c0_11 = arith.constant 0 : index
    %c0_12 = arith.constant 0 : index
    %15 = vector.load %arg6[%c0_11, %c0_12] : memref<48x8xf32, #tpu.memory_space<vmem>>, vector<48x8xf32>
    tpu.vector_store %arg6[%c0_11, %c0_12], %14 {strides = array<i32>} : memref<48x8xf32, #tpu.memory_space<vmem>>, vector<48x8xf32>,
    return
  }
  func.func @transform_0(%arg0: i32) -> (i32, i32) {
    %c0_i32 = arith.constant 0 : i32
    %c0_i32_0 = arith.constant 0 : i32
    return %arg0, %c0_i32 : i32, i32
  }
  func.func @transform_1(%arg0: i32) -> (i32, i32) {
    %c0_i32 = arith.constant 0 : i32
    %c0_i32_0 = arith.constant 0 : i32
    %c0_i32_1 = arith.constant 0 : i32
    return %c0_i32, %c0_i32_0 : i32, i32
  }
  func.func @transform_2(%arg0: i32) -> (i32, i32) {
    %c0_i32 = arith.constant 0 : i32
    %c0_i32_0 = arith.constant 0 : i32
    %c0_i32_1 = arith.constant 0 : i32
    return %c0_i32, %c0_i32_0 : i32, i32
  }
  func.func @transform_3(%arg0: i32) -> (i32, i32) {
    %c0_i32 = arith.constant 0 : i32
    %c0_i32_0 = arith.constant 0 : i32
    %c0_i32_1 = arith.constant 0 : i32
    return %c0_i32, %c0_i32_0 : i32, i32
  }
  func.func @transform_4(%arg0: i32) -> (i32, i32) {
    %c0_i32 = arith.constant 0 : i32
    %c0_i32_0 = arith.constant 0 : i32
    %c0_i32_1 = arith.constant 0 : i32
    return %c0_i32, %c0_i32_0 : i32, i32
  }
  func.func @transform_5(%arg0: i32) -> (i32, i32) {
    %c0_i32 = arith.constant 0 : i32
    %c0_i32_0 = arith.constant 0 : i32
    return %arg0, %c0_i32 : i32, i32
  }
}

module attributes {stable_mosaic.version = 11 : i64} {
  func.func @mlp_kernel(%arg0: i32, %arg1: memref<48x16xf32, #tpu.memory_space<vmem>>, %arg2: memref<16x32xbf16, #tpu.memory_space<vmem>>, %arg3: memref<1x32xf32, #tpu.memory_space<vmem>>, %arg4: memref<32x8xbf16, #tpu.memory_space<vmem>>, %arg5: memref<1x8xf32, #tpu.memory_space<vmem>>, %arg6: memref<48x8xf32, #tpu.memory_space<vmem>>) attributes {dimension_semantics = [#tpu.dimension_semantics<parallel>], iteration_bounds = array<i64: 1>, scalar_prefetch = 0 : i64, scratch_operands = 0 : i64, tpu.core_type = #tpu.core_type<tc>, window_params = [{transform_indices = @transform_0, window_bounds = array<i64: 48, 16>}, {pipeline_mode = #tpu.pipeline_mode<synchronous>, transform_indices = @transform_1, window_bounds = array<i64: 16, 32>}, {pipeline_mode = #tpu.pipeline_mode<synchronous>, transform_indices = @transform_2, window_bounds = array<i64: 1, 32>}, {pipeline_mode = #tpu.pipeline_mode<synchronous>, transform_indices = @transform_3, window_bounds = array<i64: 32, 8>}, {pipeline_mode = #tpu.pipeline_mode<synchronous>, transform_indices = @transform_4, window_bounds = array<i64: 1, 8>}, {transform_indices = @transform_5, window_bounds = array<i64: 48, 8>}]} {
    %c0 = arith.constant 0 : index
    %c0_0 = arith.constant 0 : index
    %0 = vector.load %arg1[%c0, %c0_0] : memref<48x16xf32, #tpu.memory_space<vmem>>, vector<48x16xf32>
    %1 = arith.truncf %0 : vector<48x16xf32> to vector<48x16xbf16>
    %c0_1 = arith.constant 0 : index
    %c0_2 = arith.constant 0 : index
    %2 = vector.load %arg2[%c0_1, %c0_2] : memref<16x32xbf16, #tpu.memory_space<vmem>>, vector<16x32xbf16>
    %cst = arith.constant dense<0.000000e+00> : vector<48x32xf32>
    %3 = tpu.matmul %1, %2, %cst {dimension_numbers = #tpu.dot_dimension_numbers<[1], [0], [0], [1], [0, 0, 1, 1], [], []>} : vector<48x16xbf16>, vector<16x32xbf16>, vector<48x32xf32> -> vector<48x32xf32>
    %c0_3 = arith.constant 0 : index
    %c0_4 = arith.constant 0 : index
    %4 = vector.load %arg3[%c0_3, %c0_4] : memref<1x32xf32, #tpu.memory_space<vmem>>, vector<1x32xf32>
    %5 = vector.broadcast %4 : vector<1x32xf32> to vector<48x32xf32>
    %6 = arith.addf %3, %5 : vector<48x32xf32>
    %cst_5 = arith.constant 0.000000e+00 : f32
    %7 = vector.broadcast %cst_5 : f32 to vector<48x32xf32>
    %8 = arith.maximumf %6, %7 : vector<48x32xf32>
    %9 = arith.truncf %8 : vector<48x32xf32> to vector<48x32xbf16>
    %c0_6 = arith.constant 0 : index
    %c0_7 = arith.constant 0 : index
    %10 = vector.load %arg4[%c0_6, %c0_7] : memref<32x8xbf16, #tpu.memory_space<vmem>>, vector<32x8xbf16>
    %cst_8 = arith.constant dense<0.000000e+00> : vector<48x8xf32>
    %11 = tpu.matmul %9, %10, %cst_8 {dimension_numbers = #tpu.dot_dimension_numbers<[1], [0], [0], [1], [0, 0, 1, 1], [], []>} : vector<48x32xbf16>, vector<32x8xbf16>, vector<48x8xf32> -> vector<48x8xf32>
    %c0_9 = arith.constant 0 : index
    %c0_10 = arith.constant 0 : index
    %12 = vector.load %arg5[%c0_9, %c0_10] : memref<1x8xf32, #tpu.memory_space<vmem>>, vector<1x8xf32>
    %13 = vector.broadcast %12 : vector<1x8xf32> to vector<48x8xf32>
    %14 = arith.addf %11, %13 : vector<48x8xf32>
    %c0_11 = arith.constant 0 : index
    %c0_12 = arith.constant 0 : index
    %15 = vector.load %arg6[%c0_11, %c0_12] : memref<48x8xf32, #tpu.memory_space<vmem>>, vector<48x8xf32>
    tpu.vector_store %arg6[%c0_11, %c0_12], %14 {strides = array<i32>} : memref<48x8xf32, #tpu.memory_space<vmem>>, vector<48x8xf32>,
    return
  }
  func.func @transform_0(%arg0: i32) -> (i32, i32) {
    %c0_i32 = arith.constant 0 : i32
    %c0_i32_0 = arith.constant 0 : i32
    return %arg0, %c0_i32 : i32, i32
  }
  func.func @transform_1(%arg0: i32) -> (i32, i32) {
    %c0_i32 = arith.constant 0 : i32
    %c0_i32_0 = arith.constant 0 : i32
    %c0_i32_1 = arith.constant 0 : i32
    return %c0_i32, %c0_i32_0 : i32, i32
  }
  func.func @transform_2(%arg0: i32) -> (i32, i32) {
    %c0_i32 = arith.constant 0 : i32
    %c0_i32_0 = arith.constant 0 : i32
    %c0_i32_1 = arith.constant 0 : i32
    return %c0_i32, %c0_i32_0 : i32, i32
  }
  func.func @transform_3(%arg0: i32) -> (i32, i32) {
    %c0_i32 = arith.constant 0 : i32
    %c0_i32_0 = arith.constant 0 : i32
    %c0_i32_1 = arith.constant 0 : i32
    return %c0_i32, %c0_i32_0 : i32, i32
  }
  func.func @transform_4(%arg0: i32) -> (i32, i32) {
    %c0_i32 = arith.constant 0 : i32
    %c0_i32_0 = arith.constant 0 : i32
    %c0_i32_1 = arith.constant 0 : i32
    return %c0_i32, %c0_i32_0 : i32, i32
  }
  func.func @transform_5(%arg0: i32) -> (i32, i32) {
    %c0_i32 = arith.constant 0 : i32
    %c0_i32_0 = arith.constant 0 : i32
    return %arg0, %c0_i32 : i32, i32
  }
}

</mosaic_0001>

<bundles_post_ra>
// kernel: tpu_custom_call.1
= control target key start
LH: loop header
LB: loop body
LE: loop exit
PB: predicated region body
PF: predicated region fallthrough
CT: control target
= control target key end

     0   :  { %v277_v0 = vmov 0.0   ;;  %vm278_vm0 = vmmov 0   ;;  %vm45_vm1 = vcmask 130048   ;;  %vm144_vm2 = vcmask 261120   ;;  %s375_s1 = inlined_call_operand.vmem [shape: bf16[16,32], index: 1, kind: input, shape index: {}]   ;;  %s376_s0 = inlined_call_operand.vmem [shape: f32[48,16], index: 0, kind: input, shape index: {}]   ;;  %s377_s3 = inlined_call_operand.vmem [shape: bf16[32,8], index: 3, kind: input, shape index: {}]   ;;  %s378_s2 = inlined_call_operand.vmem [shape: f32[1,32], index: 2, kind: input, shape index: {}]   ;;  %s379_s4 = inlined_call_operand.vmem [shape: f32[1,8], index: 4, kind: input, shape index: {}]   ;;  %s380_s5 = inlined_call_operand.vmem [shape: f32[48,8], index: 5, kind: output, shape index: {}]  }
   0x1   :  { %242 = vmatprep.subr.bf16.mxu0 %v277_v0  ;;  %v274_v1 = vld [vmem:[%s375_s1] sm:$0xff]   ;;  %244 = vmatprep.mubr.msk.bf16.mxu0 %vm278_vm0, %v277_v0  ;;  %v22_v3 = vld [vmem:[%s376_s0 + $0x8] sm:$0xff]  ;;  %v23_v5 = vld [vmem:[%s376_s0 + $0x10] sm:$0xff]  ;;  %vm211_vm3 = vcmask 64512  }
   0x2   :  { %v21_v2 = vld [vmem:[%s376_s0] sm:$0xff]  ;;  %256 = vmatprep.subr.bf16.mxu1 %v277_v0  ;;  %260 = vmatprep.mubr.msk.bf16.mxu1 %vm278_vm0, %v277_v0  ;;  %v24_v6 = vld [vmem:[%s376_s0 + $0x18] sm:$0xff]  ;;  %v26_v9 = vld [vmem:[%s376_s0 + $0x28] sm:$0xff] }
   0x3   :  { %243 = vmatpush3.bf16.msra.mxu0 %v274_v1  ;;  %v27_v4 = vpack.c.bf16 %v22_v3, %v21_v2  ;;  %v28_v7 = vpack.c.bf16 %v24_v6, %v23_v5  ;;  %v25_v8 = vld [vmem:[%s376_s0 + $0x20] sm:$0xff]  ;;  %v275_v11 = vld [vmem:[%s377_s3 + $0x8] sm:$0xff]  }
   0x4   :  { %v29_v10 = vpack.c.bf16 %v26_v9, %v25_v8  ;;  %257 = vmatpush3.bf16.msra.mxu1 %v275_v11  ;;  %v276_v12 = vld [vmem:[%s377_s3] sm:$0xff]  }
   0x5   :  { %258 = vmatprep.subr.bf16.mxu1 %v277_v0  ;;  %v222_v13 = vld [vmem:[%s378_s2] ss:$0 sm:$0xff] }
   0x6   :  { %245 = vmatmul.mubr.msk.bf16.vlgmr.msra.gmra.mxu0 %vm45_vm1, %v27_v4  ;;  %v227_v41 = vld [vmem:[%s379_s4] ss:$0 sm:$0xff] }
   0x7   :  { %248 = vmatprep.mubr.msk.bf16.mxu0 %vm278_vm0, %v277_v0 }
   0x8   :  { %259 = vmatpush3.bf16.msra.mxu1 %v276_v12 }
   0xe   :  { %249 = vmatmul.mubr.msk.bf16.gmra.mxu0 %vm45_vm1, %v28_v7 }
   0xf   :  { %252 = vmatprep.mubr.msk.bf16.mxu0 %vm278_vm0, %v277_v0 }
  0x16   :  { %253 = vmatmul.mubr.msk.bf16.gmra.mxu0 %vm45_vm1, %v29_v10 }
  0xc6   :  { %v89_v14 = vpop.f32.mrf.mxu0 }
  0xc7   :  { %v90_v16 = vadd.f32 %v222_v13, %v89_v14 }
  0xc8   :  { %v246_v15 = vpop.f32.mrf.mxu0 }
  0xc9   :  { %v112_v20 = vmax.f32 %v90_v16, 0.0 }
  0xca   :  { %v92_v17 = vpop.f32.mrf.mxu0 }
  0xcb   :  { %v93_v18 = vadd.f32 %v222_v13, %v92_v17 }
  0xcc   :  { %v247_v19 = vpop.f32.mrf.mxu0 }
  0xcd   :  { %v113_v21 = vmax.f32 %v93_v18, 0.0 }
  0xce   :  { %v97_v22 = vpop.f32.mrf.mxu0 }
  0xcf   :  { %v118_v23 = vpack.c.bf16 %v113_v21, %v112_v20  ;;  %v98_v25 = vadd.f32 %v222_v13, %v97_v22 }
  0xd0   :  { %v250_v24 = vpop.f32.mrf.mxu0 }
  0xd1   :  { %261 = vmatmul.mubr.msk.bf16.vlgmr.msra.gmra.mxu1 %vm144_vm2, %v118_v23  ;;  %v114_v29 = vmax.f32 %v98_v25, 0.0 }
  0xd2   :  { %v100_v26 = vpop.f32.mrf.mxu0  ;;  %264 = vmatprep.mubr.msk.bf16.mxu1 %vm278_vm0, %v277_v0 }
  0xd3   :  { %v101_v27 = vadd.f32 %v222_v13, %v100_v26 }
  0xd4   :  { %v251_v28 = vpop.f32.mrf.mxu0 }
  0xd5   :  { %v115_v30 = vmax.f32 %v101_v27, 0.0 }
  0xd6   :  { %v105_v31 = vpop.f32.mrf.mxu0 }
  0xd7   :  { %v119_v32 = vpack.c.bf16 %v115_v30, %v114_v29  ;;  %v106_v34 = vadd.f32 %v222_v13, %v105_v31 }
  0xd8   :  { %v254_v33 = vpop.f32.mrf.mxu0 }
  0xd9   :  { %265 = vmatmul.mubr.msk.bf16.gmra.mxu1 %vm144_vm2, %v119_v32  ;;  %v116_v38 = vmax.f32 %v106_v34, 0.0 }
  0xda   :  { %v108_v35 = vpop.f32.mrf.mxu0  ;;  %268 = vmatprep.mubr.msk.bf16.mxu1 %vm278_vm0, %v277_v0 }
  0xdb   :  { %v109_v36 = vadd.f32 %v222_v13, %v108_v35 }
  0xdc   :  { %v255_v37 = vpop.f32.mrf.mxu0 }
  0xdd   :  { %v117_v39 = vmax.f32 %v109_v36, 0.0 }
  0xdf   :  { %v120_v40 = vpack.c.bf16 %v117_v39, %v116_v38 }
  0xe1   :  { %269 = vmatmul.mubr.msk.bf16.gmra.mxu1 %vm144_vm2, %v120_v40 }
 0x191   :  { %v188_v42 = vpop.f32.mrf.mxu1 }
 0x192   :  { %v189_v43 = vadd.f32 %v227_v41, %v188_v42 }
 0x193   :  { %v262_v44 = vpop.f32.mrf.mxu1 }
 0x194   :  { %212 = vst.msk [vmem:[%s380_s5] sm:$0xff] %vm211_vm3, %v189_v43 }
 0x195   :  { %v191_v45 = vpop.f32.mrf.mxu1 }
 0x196   :  { %v192_v46 = vadd.f32 %v227_v41, %v191_v45 }
 0x197   :  { %v263_v47 = vpop.f32.mrf.mxu1 }
 0x198   :  { %213 = vst.msk [vmem:[%s380_s5 + $0x8] sm:$0xff] %vm211_vm3, %v192_v46 }
 0x199   :  { %v196_v48 = vpop.f32.mrf.mxu1 }
 0x19a   :  { %v197_v49 = vadd.f32 %v227_v41, %v196_v48 }
 0x19b   :  { %v266_v50 = vpop.f32.mrf.mxu1 }
 0x19c   :  { %214 = vst.msk [vmem:[%s380_s5 + $0x10] sm:$0xff] %vm211_vm3, %v197_v49 }
 0x19d   :  { %v199_v51 = vpop.f32.mrf.mxu1 }
 0x19e   :  { %v200_v52 = vadd.f32 %v227_v41, %v199_v51 }
 0x19f   :  { %v267_v53 = vpop.f32.mrf.mxu1 }
 0x1a0   :  { %215 = vst.msk [vmem:[%s380_s5 + $0x18] sm:$0xff] %vm211_vm3, %v200_v52 }
 0x1a1   :  { %v204_v54 = vpop.f32.mrf.mxu1 }
 0x1a2   :  { %v205_v55 = vadd.f32 %v227_v41, %v204_v54 }
 0x1a3   :  { %v270_v56 = vpop.f32.mrf.mxu1 }
 0x1a4   :  { %216 = vst.msk [vmem:[%s380_s5 + $0x20] sm:$0xff] %vm211_vm3, %v205_v55 }
 0x1a5   :  { %v207_v57 = vpop.f32.mrf.mxu1 }
 0x1a6   :  { %v208_v58 = vadd.f32 %v227_v41, %v207_v57 }
 0x1a7   :  { %v271_v59 = vpop.f32.mrf.mxu1 }
 0x1a8   :  { %217 = vst.msk [vmem:[%s380_s5 + $0x28] sm:$0xff] %vm211_vm3, %v208_v58 }

// kernel: tpu_custom_call.1
= control target key start
LH: loop header
LB: loop body
LE: loop exit
PB: predicated region body
PF: predicated region fallthrough
CT: control target
= control target key end

     0   :  { %v277_v0 = vmov 0.0   ;;  %vm278_vm0 = vmmov 0   ;;  %vm45_vm1 = vcmask 130048   ;;  %vm144_vm2 = vcmask 261120   ;;  %s375_s1 = inlined_call_operand.vmem [shape: bf16[16,32], index: 1, kind: input, shape index: {}]   ;;  %s376_s0 = inlined_call_operand.vmem [shape: f32[48,16], index: 0, kind: input, shape index: {}]   ;;  %s377_s3 = inlined_call_operand.vmem [shape: bf16[32,8], index: 3, kind: input, shape index: {}]   ;;  %s378_s2 = inlined_call_operand.vmem [shape: f32[1,32], index: 2, kind: input, shape index: {}]   ;;  %s379_s4 = inlined_call_operand.vmem [shape: f32[1,8], index: 4, kind: input, shape index: {}]   ;;  %s380_s5 = inlined_call_operand.vmem [shape: f32[48,8], index: 5, kind: output, shape index: {}]  }
   0x1   :  { %242 = vmatprep.subr.bf16.mxu0 %v277_v0  ;;  %v274_v1 = vld [vmem:[%s375_s1] sm:$0xff]   ;;  %244 = vmatprep.mubr.msk.bf16.mxu0 %vm278_vm0, %v277_v0  ;;  %v22_v3 = vld [vmem:[%s376_s0 + $0x8] sm:$0xff]  ;;  %v23_v5 = vld [vmem:[%s376_s0 + $0x10] sm:$0xff]  ;;  %vm211_vm3 = vcmask 64512  }
   0x2   :  { %v21_v2 = vld [vmem:[%s376_s0] sm:$0xff]  ;;  %256 = vmatprep.subr.bf16.mxu1 %v277_v0  ;;  %260 = vmatprep.mubr.msk.bf16.mxu1 %vm278_vm0, %v277_v0  ;;  %v24_v6 = vld [vmem:[%s376_s0 + $0x18] sm:$0xff]  ;;  %v26_v9 = vld [vmem:[%s376_s0 + $0x28] sm:$0xff] }
   0x3   :  { %243 = vmatpush3.bf16.msra.mxu0 %v274_v1  ;;  %v27_v4 = vpack.c.bf16 %v22_v3, %v21_v2  ;;  %v28_v7 = vpack.c.bf16 %v24_v6, %v23_v5  ;;  %v25_v8 = vld [vmem:[%s376_s0 + $0x20] sm:$0xff]  ;;  %v275_v11 = vld [vmem:[%s377_s3 + $0x8] sm:$0xff]  }
   0x4   :  { %v29_v10 = vpack.c.bf16 %v26_v9, %v25_v8  ;;  %257 = vmatpush3.bf16.msra.mxu1 %v275_v11  ;;  %v276_v12 = vld [vmem:[%s377_s3] sm:$0xff]  }
   0x5   :  { %258 = vmatprep.subr.bf16.mxu1 %v277_v0  ;;  %v222_v13 = vld [vmem:[%s378_s2] ss:$0 sm:$0xff] }
   0x6   :  { %245 = vmatmul.mubr.msk.bf16.vlgmr.msra.gmra.mxu0 %vm45_vm1, %v27_v4  ;;  %v227_v41 = vld [vmem:[%s379_s4] ss:$0 sm:$0xff] }
   0x7   :  { %248 = vmatprep.mubr.msk.bf16.mxu0 %vm278_vm0, %v277_v0 }
   0x8   :  { %259 = vmatpush3.bf16.msra.mxu1 %v276_v12 }
   0xe   :  { %249 = vmatmul.mubr.msk.bf16.gmra.mxu0 %vm45_vm1, %v28_v7 }
   0xf   :  { %252 = vmatprep.mubr.msk.bf16.mxu0 %vm278_vm0, %v277_v0 }
  0x16   :  { %253 = vmatmul.mubr.msk.bf16.gmra.mxu0 %vm45_vm1, %v29_v10 }
  0xc6   :  { %v89_v14 = vpop.f32.mrf.mxu0 }
  0xc7   :  { %v90_v16 = vadd.f32 %v222_v13, %v89_v14 }
  0xc8   :  { %v246_v15 = vpop.f32.mrf.mxu0 }
  0xc9   :  { %v112_v20 = vmax.f32 %v90_v16, 0.0 }
  0xca   :  { %v92_v17 = vpop.f32.mrf.mxu0 }
  0xcb   :  { %v93_v18 = vadd.f32 %v222_v13, %v92_v17 }
  0xcc   :  { %v247_v19 = vpop.f32.mrf.mxu0 }
  0xcd   :  { %v113_v21 = vmax.f32 %v93_v18, 0.0 }
  0xce   :  { %v97_v22 = vpop.f32.mrf.mxu0 }
  0xcf   :  { %v118_v23 = vpack.c.bf16 %v113_v21, %v112_v20  ;;  %v98_v25 = vadd.f32 %v222_v13, %v97_v22 }
  0xd0   :  { %v250_v24 = vpop.f32.mrf.mxu0 }
  0xd1   :  { %261 = vmatmul.mubr.msk.bf16.vlgmr.msra.gmra.mxu1 %vm144_vm2, %v118_v23  ;;  %v114_v29 = vmax.f32 %v98_v25, 0.0 }
  0xd2   :  { %v100_v26 = vpop.f32.mrf.mxu0  ;;  %264 = vmatprep.mubr.msk.bf16.mxu1 %vm278_vm0, %v277_v0 }
  0xd3   :  { %v101_v27 = vadd.f32 %v222_v13, %v100_v26 }
  0xd4   :  { %v251_v28 = vpop.f32.mrf.mxu0 }
  0xd5   :  { %v115_v30 = vmax.f32 %v101_v27, 0.0 }
  0xd6   :  { %v105_v31 = vpop.f32.mrf.mxu0 }
  0xd7   :  { %v119_v32 = vpack.c.bf16 %v115_v30, %v114_v29  ;;  %v106_v34 = vadd.f32 %v222_v13, %v105_v31 }
  0xd8   :  { %v254_v33 = vpop.f32.mrf.mxu0 }
  0xd9   :  { %265 = vmatmul.mubr.msk.bf16.gmra.mxu1 %vm144_vm2, %v119_v32  ;;  %v116_v38 = vmax.f32 %v106_v34, 0.0 }
  0xda   :  { %v108_v35 = vpop.f32.mrf.mxu0  ;;  %268 = vmatprep.mubr.msk.bf16.mxu1 %vm278_vm0, %v277_v0 }
  0xdb   :  { %v109_v36 = vadd.f32 %v222_v13, %v108_v35 }
  0xdc   :  { %v255_v37 = vpop.f32.mrf.mxu0 }
  0xdd   :  { %v117_v39 = vmax.f32 %v109_v36, 0.0 }
  0xdf   :  { %v120_v40 = vpack.c.bf16 %v117_v39, %v116_v38 }
  0xe1   :  { %269 = vmatmul.mubr.msk.bf16.gmra.mxu1 %vm144_vm2, %v120_v40 }
 0x191   :  { %v188_v42 = vpop.f32.mrf.mxu1 }
 0x192   :  { %v189_v43 = vadd.f32 %v227_v41, %v188_v42 }
 0x193   :  { %v262_v44 = vpop.f32.mrf.mxu1 }
 0x194   :  { %212 = vst.msk [vmem:[%s380_s5] sm:$0xff] %vm211_vm3, %v189_v43 }
 0x195   :  { %v191_v45 = vpop.f32.mrf.mxu1 }
 0x196   :  { %v192_v46 = vadd.f32 %v227_v41, %v191_v45 }
 0x197   :  { %v263_v47 = vpop.f32.mrf.mxu1 }
 0x198   :  { %213 = vst.msk [vmem:[%s380_s5 + $0x8] sm:$0xff] %vm211_vm3, %v192_v46 }
 0x199   :  { %v196_v48 = vpop.f32.mrf.mxu1 }
 0x19a   :  { %v197_v49 = vadd.f32 %v227_v41, %v196_v48 }
 0x19b   :  { %v266_v50 = vpop.f32.mrf.mxu1 }
 0x19c   :  { %214 = vst.msk [vmem:[%s380_s5 + $0x10] sm:$0xff] %vm211_vm3, %v197_v49 }
 0x19d   :  { %v199_v51 = vpop.f32.mrf.mxu1 }
 0x19e   :  { %v200_v52 = vadd.f32 %v227_v41, %v199_v51 }
 0x19f   :  { %v267_v53 = vpop.f32.mrf.mxu1 }
 0x1a0   :  { %215 = vst.msk [vmem:[%s380_s5 + $0x18] sm:$0xff] %vm211_vm3, %v200_v52 }
 0x1a1   :  { %v204_v54 = vpop.f32.mrf.mxu1 }
 0x1a2   :  { %v205_v55 = vadd.f32 %v227_v41, %v204_v54 }
 0x1a3   :  { %v270_v56 = vpop.f32.mrf.mxu1 }
 0x1a4   :  { %216 = vst.msk [vmem:[%s380_s5 + $0x20] sm:$0xff] %vm211_vm3, %v205_v55 }
 0x1a5   :  { %v207_v57 = vpop.f32.mrf.mxu1 }
 0x1a6   :  { %v208_v58 = vadd.f32 %v227_v41, %v207_v57 }
 0x1a7   :  { %v271_v59 = vpop.f32.mrf.mxu1 }
 0x1a8   :  { %217 = vst.msk [vmem:[%s380_s5 + $0x28] sm:$0xff] %vm211_vm3, %v208_v58 }

</bundles_post_ra>
